<compile_context>
chip_gen: v5e
topology: v5e:2x2
jax: 0.10.0
libtpu: 0.0.40
codegen_flags: <defaults>
</compile_context>

<pallas_src>
import functools
from functools import partial

import jax
import jax.numpy as jnp
from jax import lax
from jax.experimental import pallas as pl
from jax.experimental.pallas import tpu as pltpu


# --------------------------------------------------------------------------- #
# Hardware-aware tiling helpers
# --------------------------------------------------------------------------- #
def _vmem_budget():
    """(per-block byte cap, vmem_limit_bytes), generation aware.

    The fused kernels keep several live full-tile f32 temporaries on top of the
    double-buffered in/out blocks, so the block cap is conservative w.r.t. the
    physical VMEM of the generation (64 MiB on v7x, 128 MiB on v5e/v6e)."""
    try:
        info = pltpu.get_tpu_info()
        vmem_cap = int(getattr(info, "vmem_capacity_bytes", 64 * 1024 * 1024))
    except Exception:
        vmem_cap = 64 * 1024 * 1024
    if vmem_cap >= 128 * 1024 * 1024:          # v5e / v6e
        return 4 * 1024 * 1024, 64 * 1024 * 1024
    return 2 * 1024 * 1024, 40 * 1024 * 1024    # v7x


def _sublane_align(dtype) -> int:
    # packed-sublane alignment: 8 (f32) / 16 (bf16) / 32 (int8, fp8)
    return max(8, 32 // jnp.dtype(dtype).itemsize)


def _pick_row_tile(rows, row_bytes, align, block_cap, min_blocks=1):
    """Rows per block for a slab tiled along rows only (pl.cdiv grid, padded edge)."""
    if rows <= align:
        return rows                                    # full extent is always legal
    max_rows = max(align, (block_cap // max(1, row_bytes)) // align * align)
    tr = min(max_rows, rows)
    if tr < rows:
        tr = max(align, (tr // align) * align)         # aligned non-edge blocks
    if min_blocks > 1 and pl.cdiv(rows, tr) < min_blocks:
        tr = max(align, (pl.cdiv(rows, min_blocks) // align) * align)
    return tr


def _pick_lane_tile(lanes, col_bytes, block_cap, min_blocks=1):
    """Lanes per block (multiple of 128 unless full extent; pl.cdiv grid)."""
    if lanes <= 128:
        return lanes
    max_lanes = max(128, (block_cap // max(1, col_bytes)) // 128 * 128)
    tl = min(max_lanes, lanes)
    if tl < lanes:
        tl = max(128, (tl // 128) * 128)
    if min_blocks > 1 and pl.cdiv(lanes, tl) < min_blocks:
        tl = max(128, (pl.cdiv(lanes, min_blocks) // 128) * 128)
    return tl


def _compiler_params(dims, vmem_limit):
    return pltpu.CompilerParams(dimension_semantics=dims,
                                vmem_limit_bytes=vmem_limit)


@functools.lru_cache(maxsize=None)
def _roll_is_jnp_convention() -> bool:
    """True if pltpu.roll(x, 1, axis=-1)[..., i] == x[..., i-1] (jnp.roll convention).
    One-off probe so the pooling kernel is correct under either rotate convention."""
    def k(x_ref, o_ref):
        o_ref[...] = pltpu.roll(x_ref[...], 1, axis=1)
    x = lax.broadcasted_iota(jnp.float32, (8, 128), 1)
    y = pl.pallas_call(k, out_shape=jax.ShapeDtypeStruct((8, 128), jnp.float32))(x)
    return bool(y[0, 1] == 0.0)


def _dp_keep_scale(rand_u, p, batch):
    """Per-sample keep scale, PyTorch DP formula: floor(u + 1 - p) / (1 - p)."""
    if p <= 0.0 or rand_u is None:
        return jnp.ones((batch,), jnp.float32)
    return jnp.floor(rand_u.astype(jnp.float32) + (1.0 - p)) / (1.0 - p)


# --------------------------------------------------------------------------- #
# Plain-jnp fallbacks (tiny tensors / also used as the stage-1 reference)
# --------------------------------------------------------------------------- #
def _pool_mixer_residual_jnp(x, s_c, b_c, ls, dp):
    y = x.astype(jnp.float32) * s_c[None, :, None, None] + b_c[None, :, None, None]
    sm = lax.reduce_window(y, jnp.float32(0), lax.add, (1, 1, 3, 3), (1, 1, 1, 1), "SAME")
    cn = lax.reduce_window(jnp.ones_like(y), jnp.float32(0), lax.add,
                           (1, 1, 3, 3), (1, 1, 1, 1), "SAME")
    mix = sm / cn - y
    out = x.astype(jnp.float32) + (dp[:, None, None, None] * ls[None, :, None, None]) * mix
    return out.astype(x.dtype)


def _cffn_residual_jnp(x3, a1, c1, a2, c2, a3, c3, ls, dp):
    B, C, H, W = x3.shape
    z = x3.reshape(B, C, H * W).astype(jnp.float32)
    c1 = jnp.reshape(c1, (-1, 1)); c2 = jnp.reshape(c2, (-1, 1)); c3 = jnp.reshape(c3, (-1, 1))
    h1 = jax.nn.relu(jnp.einsum("oc,bcl->bol", a1, z) + c1[None])
    h2 = jax.nn.relu(jnp.einsum("oc,bcl->bol", a2, h1) + c2[None])
    f = jnp.einsum("oc,bcl->bol", a3, h2) + c3[None]
    out = z + (dp[:, None, None] * ls[None, :, None]) * f
    return out.astype(x3.dtype).reshape(B, C, H, W)


# --------------------------------------------------------------------------- #
# Stage 1: BN1 + PoolMixer + layer_scale + DropPath + residual   (one kernel)
# --------------------------------------------------------------------------- #
def _pool_mixer_res_kernel(maps_ref, bns_ref, bnb_ref, rs_ref, x_ref, o_ref,
                           *, H, W, s_m1, s_p1, s_mW, s_pW):
    """out = x + rs * (AvgPool3x3(bn(x), count_include_pad=False) - bn(x)).

    x_ref / o_ref : (TR, H*W) lane-dense tiles (one row == one (b, c) plane)
    maps_ref      : (5, H*W)  [left-mask, right-mask, up-mask, down-mask, 1/count]
    bns/bnb/rs    : (TR, 1)   per-row BN scale / BN bias / drop_path*layer_scale
    """
    x = x_ref[...].astype(jnp.float32)
    y = x * bns_ref[...] + bnb_ref[...]                       # folded BatchNorm1
    maps = maps_ref[...]
    m_l, m_r = maps[0:1, :], maps[1:2, :]
    m_u, m_d = maps[2:3, :], maps[3:4, :]
    inv_cnt = maps[4:5, :]
    sw = y
    if W > 1:   # 3-tap sum along an image row (lane rolls; masks kill the wrap)
        sw = sw + m_l * pltpu.roll(y, s_m1, axis=1) + m_r * pltpu.roll(y, s_p1, axis=1)
    s = sw
    if H > 1:   # 3-tap sum across image rows (lane roll by +-W)
        s = s + m_u * pltpu.roll(sw, s_mW, axis=1) + m_d * pltpu.roll(sw, s_pW, axis=1)
    pooled = s * inv_cnt                                      # count_include_pad=False
    o_ref[...] = (x + rs_ref[...] * (pooled - y)).astype(o_ref.dtype)


def pool_mixer_residual(x, bn_scale_c, bn_bias_c, layer_scale_c, dp_scale_b, *,
                        donate_residual=False, small_fallback_bytes=0):
    """x + dp*layer_scale*(AvgPool3x3(BN1(x)) - BN1(x))  — MFblock stage 1, fused."""
    B, C, H, W = x.shape
    R, L = B * C, H * W
    s_c = jnp.reshape(bn_scale_c, (-1,)).astype(jnp.float32)
    b_c = jnp.reshape(bn_bias_c, (-1,)).astype(jnp.float32)
    ls = jnp.reshape(layer_scale_c, (-1,)).astype(jnp.float32)
    dp = jnp.reshape(dp_scale_b, (-1,)).astype(jnp.float32)

    if x.size * x.dtype.itemsize < small_fallback_bytes:
        return _pool_mixer_residual_jnp(x, s_c, b_c, ls, dp)

    # per-row (= per (b, c) plane) parameters
    s_row = jnp.broadcast_to(s_c[None, :], (B, C)).reshape(R, 1)
    b_row = jnp.broadcast_to(b_c[None, :], (B, C)).reshape(R, 1)
    rs_row = (dp[:, None] * ls[None, :]).reshape(R, 1)

    # spatial edge masks + inverse pool counts (tiny, fetched once)
    ww = jnp.arange(L, dtype=jnp.int32) % W
    hh = jnp.arange(L, dtype=jnp.int32) // W
    m_l = (ww != 0).astype(jnp.float32)
    m_r = (ww != W - 1).astype(jnp.float32)
    m_u = (hh != 0).astype(jnp.float32)
    m_d = (hh != H - 1).astype(jnp.float32)
    cnt = (1.0 + m_l + m_r) * (1.0 + m_u + m_d)
    maps = jnp.stack([m_l, m_r, m_u, m_d, 1.0 / cnt], axis=0)      # (5, L)

    x2 = x.reshape(R, L)
    block_cap, vmem_limit = _vmem_budget()
    tr = _pick_row_tile(R, L * x.dtype.itemsize, _sublane_align(x.dtype),
                        block_cap, min_blocks=2)
    grid = (pl.cdiv(R, tr),)

    fwd = _roll_is_jnp_convention()
    # static lane-roll amounts that place y[l-1], y[l+1], y[l-W], y[l+W] at position l
    s_m1, s_p1 = (1, L - 1) if fwd else (L - 1, 1)
    s_mW, s_pW = (W, L - W) if fwd else (L - W, W)

    out2 = pl.pallas_call(
        partial(_pool_mixer_res_kernel, H=H, W=W,
                s_m1=s_m1, s_p1=s_p1, s_mW=s_mW, s_pW=s_pW),
        out_shape=jax.ShapeDtypeStruct((R, L), x.dtype),
        grid=grid,
        in_specs=[
            pl.BlockSpec((5, L), lambda i: (0, 0)),     # masks / 1/count (constant)
            pl.BlockSpec((tr, 1), lambda i: (i, 0)),    # BN scale per row
            pl.BlockSpec((tr, 1), lambda i: (i, 0)),    # BN bias per row
            pl.BlockSpec((tr, 1), lambda i: (i, 0)),    # drop_path * layer_scale per row
            pl.BlockSpec((tr, L), lambda i: (i, 0)),    # x (residual + BN input)
        ],
        out_specs=pl.BlockSpec((tr, L), lambda i: (i, 0)),
        compiler_params=_compiler_params(("parallel",), vmem_limit),
        input_output_aliases=({4: 0} if donate_residual else {}),
    )(maps, s_row, b_row, rs_row, x2)
    return out2.reshape(B, C, H, W)


# --------------------------------------------------------------------------- #
# Stage 2: BN2 + CFFN (3x 1x1 conv, 2x BN, 2x ReLU) + layer_scale + DropPath
#          + residual   (one kernel; BNs folded into the conv weights)
# --------------------------------------------------------------------------- #
def _cffn_res_kernel(a1_ref, c1_ref, a2_ref, c2_ref, a3_ref, c3_ref, rs_ref,
                     x_ref, o_ref):
    x = x_ref[0].astype(jnp.float32)                               # (C, TL)
    h1 = jnp.maximum(
        jnp.dot(a1_ref[...], x, preferred_element_type=jnp.float32) + c1_ref[...], 0.0)
    h2 = jnp.maximum(
        jnp.dot(a2_ref[...], h1, preferred_element_type=jnp.float32) + c2_ref[...], 0.0)
    f = jnp.dot(a3_ref[...], h2, preferred_element_type=jnp.float32) + c3_ref[...]
    o_ref[0] = (x + rs_ref[0] * f).astype(o_ref.dtype)


def cffn_residual(x3, a1, c1, a2, c2, a3, c3, layer_scale_c, dp_scale_b, *,
                  small_fallback_bytes=0):
    """x3 + dp*layer_scale*CFFN(BN2(x3)) — MFblock stage 2, fully fused."""
    B, C, H, W = x3.shape
    L = H * W
    Ch = a1.shape[0]
    ls = jnp.reshape(layer_scale_c, (-1,)).astype(jnp.float32)
    dp = jnp.reshape(dp_scale_b, (-1,)).astype(jnp.float32)
    a1 = a1.astype(jnp.float32); a2 = a2.astype(jnp.float32); a3 = a3.astype(jnp.float32)
    c1 = jnp.reshape(c1, (Ch, 1)).astype(jnp.float32)
    c2 = jnp.reshape(c2, (Ch, 1)).astype(jnp.float32)
    c3 = jnp.reshape(c3, (C, 1)).astype(jnp.float32)

    if x3.size * x3.dtype.itemsize < small_fallback_bytes:
        return _cffn_residual_jnp(x3, a1, c1, a2, c2, a3, c3, ls, dp)

    rs = (dp[:, None] * ls[None, :]).reshape(B, C, 1)
    x3r = x3.reshape(B, C, L)

    block_cap, vmem_limit = _vmem_budget()
    tl = _pick_lane_tile(L, C * x3.dtype.itemsize, block_cap,
                         min_blocks=2 if B == 1 else 1)
    grid = (B, pl.cdiv(L, tl))

    out = pl.pallas_call(
        _cffn_res_kernel,
        out_shape=jax.ShapeDtypeStruct((B, C, L), x3.dtype),
        grid=grid,
        in_specs=[
            pl.BlockSpec((Ch, C), lambda b, j: (0, 0)),        # A1 (BN2 & BNf1 folded)
            pl.BlockSpec((Ch, 1), lambda b, j: (0, 0)),        # c1
            pl.BlockSpec((Ch, Ch), lambda b, j: (0, 0)),       # A2 (BNf2 folded)
            pl.BlockSpec((Ch, 1), lambda b, j: (0, 0)),        # c2
            pl.BlockSpec((C, Ch), lambda b, j: (0, 0)),        # A3
            pl.BlockSpec((C, 1), lambda b, j: (0, 0)),         # c3
            pl.BlockSpec((1, C, 1), lambda b, j: (b, 0, 0)),   # dp*layer_scale per (b,c)
            pl.BlockSpec((1, C, tl), lambda b, j: (b, 0, j)),  # x3 (residual + CFFN input)
        ],
        out_specs=pl.BlockSpec((1, C, tl), lambda b, j: (b, 0, j)),
        compiler_params=_compiler_params(("parallel", "parallel"), vmem_limit),
    )(a1, c1, a2, c2, a3, c3, rs, x3r)
    return out.reshape(B, C, H, W)


# --------------------------------------------------------------------------- #
# Standalone DropPath (DP module), lane-dense (B, C*H*W) layout
# --------------------------------------------------------------------------- #
def _dp_kernel(scale_ref, x_ref, o_ref):
    o_ref[...] = (x_ref[...] * scale_ref[...]).astype(o_ref.dtype)


def drop_path(x, rand_u, p=0.3, *, small_fallback_bytes=0):
    assert 0.0 <= p < 1.0
    if p == 0.0:
        return x
    B = x.shape[0]
    Lf = x.size // B
    scale = (jnp.floor(rand_u.astype(jnp.float32) + (1.0 - p)) / (1.0 - p)).reshape(B, 1)
    x2 = x.reshape(B, Lf)
    if x.size * x.dtype.itemsize < small_fallback_bytes:
        return (x2 * scale).astype(x.dtype).reshape(x.shape)
    block_cap, vmem_limit = _vmem_budget()
    tl = _pick_lane_tile(Lf, max(1, B) * x.dtype.itemsize, block_cap, min_blocks=2)
    grid = (pl.cdiv(Lf, tl),)
    out2 = pl.pallas_call(
        _dp_kernel,
        out_shape=jax.ShapeDtypeStruct((B, Lf), x.dtype),
        grid=grid,
        in_specs=[
            pl.BlockSpec((B, 1), lambda j: (0, 0)),
            pl.BlockSpec((B, tl), lambda j: (0, j)),
        ],
        out_specs=pl.BlockSpec((B, tl), lambda j: (0, j)),
        compiler_params=_compiler_params(("parallel",), vmem_limit),
    )(scale, x2)
    return out2.reshape(x.shape)


# --------------------------------------------------------------------------- #
# Full MFblock forward (pre-norm, pool mixer, bn norms, CFFN)
# --------------------------------------------------------------------------- #
def mfblock_forward(x, prm, *, drop_path_p=0.0, rand_u1=None, rand_u2=None,
                    eps=1e-5, donate_residual=False, small_fallback_bytes=0):
    """MFblock.forward_preNorm_attn with token_mixer='pool', norm='bn', 1-hidden-layer CFFN.

    prm keys:
      g1,b1,m1,v1 / g2,b2,m2,v2 : BatchNorm1/2 gamma, beta, mean, var   (C,)
      w1 (Ch,C), bw1 (Ch,), gf1,bf1,mf1,vf1 (Ch,)  : CFFN conv1 + BN
      w2 (Ch,Ch), bw2 (Ch,), gf2,bf2,mf2,vf2 (Ch,) : CFFN conv2 + BN
      w3 (C,Ch),  bw3 (C,)                          : CFFN conv3
      ls1, ls2 (C,) : layer scales
    """
    B = x.shape[0]

    def bn_affine(g, b, m, v):
        s = (g / jnp.sqrt(v + eps)).astype(jnp.float32)
        return s, (b - m * s).astype(jnp.float32)

    dp1 = _dp_keep_scale(rand_u1, drop_path_p, B)
    dp2 = _dp_keep_scale(rand_u2, drop_path_p, B)

    # stage 1: x3 = x + dp1*ls1*(avgpool3x3(bn1(x)) - bn1(x))
    s1, b1 = bn_affine(prm['g1'], prm['b1'], prm['m1'], prm['v1'])
    x3 = pool_mixer_residual(x, s1, b1, prm['ls1'], dp1,
                             donate_residual=donate_residual,
                             small_fallback_bytes=small_fallback_bytes)

    # stage 2: fold norm2 + both CFFN BatchNorms into the 1x1-conv weights
    s2, b2 = bn_affine(prm['g2'], prm['b2'], prm['m2'], prm['v2'])
    sf1, bf1 = bn_affine(prm['gf1'], prm['bf1'], prm['mf1'], prm['vf1'])
    sf2, bf2 = bn_affine(prm['gf2'], prm['bf2'], prm['mf2'], prm['vf2'])
    w1 = prm['w1'].astype(jnp.float32)
    w2 = prm['w2'].astype(jnp.float32)
    w3 = prm['w3'].astype(jnp.float32)
    a1 = sf1[:, None] * (w1 * s2[None, :])
    c1 = sf1 * (w1 @ b2 + prm['bw1'].astype(jnp.float32)) + bf1
    a2 = sf2[:, None] * w2
    c2 = sf2 * prm['bw2'].astype(jnp.float32) + bf2
    a3 = w3
    c3 = prm['bw3'].astype(jnp.float32)

    return cffn_residual(x3, a1, c1, a2, c2, a3, c3, prm['ls2'], dp2,
                         small_fallback_bytes=small_fallback_bytes)


# --------------------------------------------------------------------------- #
# Pure-JAX (unfolded) reference of MFblock.forward_preNorm_attn
# --------------------------------------------------------------------------- #
def mfblock_forward_ref(x, prm, rand_u1, rand_u2, drop_path_p, eps=1e-5):
    B, C, H, W = x.shape
    hp = lax.Precision.HIGHEST

    def bn(y, g, b, m, v):
        s = g / jnp.sqrt(v + eps)
        return (y - m[None, :, None, None]) * s[None, :, None, None] + b[None, :, None, None]

    def conv1x1(y, w, b):
        return jnp.einsum("oc,bchw->bohw", w, y, precision=hp) + b[None, :, None, None]

    def dp(u):
        if drop_path_p <= 0.0 or u is None:
            return jnp.ones((B, 1, 1, 1), jnp.float32)
        return (jnp.floor(u + (1.0 - drop_path_p)) / (1.0 - drop_path_p)).reshape(B, 1, 1, 1)

    y = bn(x, prm['g1'], prm['b1'], prm['m1'], prm['v1'])
    sm = lax.reduce_window(y, jnp.float32(0), lax.add, (1, 1, 3, 3), (1, 1, 1, 1), "SAME")
    cn = lax.reduce_window(jnp.ones_like(y), jnp.float32(0), lax.add,
                           (1, 1, 3, 3), (1, 1, 1, 1), "SAME")
    x3 = x + dp(rand_u1) * prm['ls1'][None, :, None, None] * (sm / cn - y)

    y2 = bn(x3, prm['g2'], prm['b2'], prm['m2'], prm['v2'])
    h1 = jax.nn.relu(bn(conv1x1(y2, prm['w1'], prm['bw1']),
                        prm['gf1'], prm['bf1'], prm['mf1'], prm['vf1']))
    h2 = jax.nn.relu(bn(conv1x1(h1, prm['w2'], prm['bw2']),
                        prm['gf2'], prm['bf2'], prm['mf2'], prm['vf2']))
    f = conv1x1(h2, prm['w3'], prm['bw3'])
    return x3 + dp(rand_u2) * prm['ls2'][None, :, None, None] * f


# --------------------------------------------------------------------------- #
if __name__ == "__main__":
    key = jax.random.PRNGKey(0)
    keys = iter(jax.random.split(key, 32))

    B, C, H, W = 2, 32, 16, 16            # small MFblock: d_model=32
    Ch = max(1, int(C * 0.25))            # ffn_hdim_ratio = 0.25 -> hidden = 8
    dp_p = 0.3

    def nrm(shape, s=1.0):
        return jax.random.normal(next(keys), shape, jnp.float32) * s

    def uni(shape, lo, hi):
        return jax.random.uniform(next(keys), shape, jnp.float32, lo, hi)

    x = nrm((B, C, H, W))
    prm = dict(
        g1=uni((C,), 0.5, 1.5), b1=nrm((C,), 0.1), m1=nrm((C,), 0.1), v1=uni((C,), 0.5, 1.5),
        g2=uni((C,), 0.5, 1.5), b2=nrm((C,), 0.1), m2=nrm((C,), 0.1), v2=uni((C,), 0.5, 1.5),
        gf1=uni((Ch,), 0.5, 1.5), bf1=nrm((Ch,), 0.1), mf1=nrm((Ch,), 0.1), vf1=uni((Ch,), 0.5, 1.5),
        gf2=uni((Ch,), 0.5, 1.5), bf2=nrm((Ch,), 0.1), mf2=nrm((Ch,), 0.1), vf2=uni((Ch,), 0.5, 1.5),
        w1=nrm((Ch, C), 0.2), bw1=nrm((Ch,), 0.1),
        w2=nrm((Ch, Ch), 0.2), bw2=nrm((Ch,), 0.1),
        w3=nrm((C, Ch), 0.2), bw3=nrm((C,), 0.1),
        ls1=uni((C,), 0.05, 0.15), ls2=uni((C,), 0.05, 0.15),
    )
    ru1 = jax.random.uniform(next(keys), (B,), jnp.float32)
    ru2 = jax.random.uniform(next(keys), (B,), jnp.float32)

    # stage-1 kernel (pure VPU math) vs jnp: tight tolerance
    eps = 1e-5
    s1 = prm['g1'] / jnp.sqrt(prm['v1'] + eps)
    b1 = prm['b1'] - prm['m1'] * s1
    dp1 = jnp.floor(ru1 + (1.0 - dp_p)) / (1.0 - dp_p)
    x3_k = jax.block_until_ready(pool_mixer_residual(x, s1, b1, prm['ls1'], dp1))
    x3_r = _pool_mixer_residual_jnp(x, s1, b1, prm['ls1'], dp1)
    assert x3_k.shape == x.shape and x3_k.dtype == x.dtype
    assert jnp.allclose(x3_k, x3_r, atol=1e-5, rtol=1e-5), \
        float(jnp.max(jnp.abs(x3_k - x3_r)))

    # full fused MFblock forward vs unfolded reference
    out = jax.block_until_ready(
        mfblock_forward(x, prm, drop_path_p=dp_p, rand_u1=ru1, rand_u2=ru2))
    ref = mfblock_forward_ref(x, prm, ru1, ru2, dp_p)
    assert out.shape == x.shape and out.dtype == x.dtype
    # tolerance absorbs MXU default-precision differences between the folded
    # (in-kernel) and unfolded (reference) 1x1-conv formulations
    assert jnp.allclose(out, ref, atol=5e-3, rtol=5e-3), \
        float(jnp.max(jnp.abs(out - ref)))

    # standalone DropPath module
    dpo = jax.block_until_ready(drop_path(x, ru1, dp_p))
    dpr = x / (1.0 - dp_p) * jnp.floor(ru1.reshape(-1, 1, 1, 1) + 1.0 - dp_p)
    assert jnp.allclose(dpo, dpr, atol=1e-5, rtol=1e-5)

    print("KERNEL_OK")
</pallas_src>

<mosaic_0001>
module attributes {stable_mosaic.version = 11 : i64} {
  func.func @k(%arg0: memref<8x128xf32, #tpu.memory_space<vmem>>, %arg1: memref<8x128xf32, #tpu.memory_space<vmem>>) attributes {dimension_semantics = [], scalar_prefetch = 0 : i64, scratch_operands = 0 : i64, tpu.core_type = #tpu.core_type<tc>} {
    %c0 = arith.constant 0 : index
    %c0_0 = arith.constant 0 : index
    %0 = vector.load %arg0[%c0, %c0_0] : memref<8x128xf32, #tpu.memory_space<vmem>>, vector<8x128xf32>
    %c1_i32 = arith.constant 1 : i32
    %1 = tpu.dynamic_rotate %0 by %c1_i32 dim 1 : vector<8x128xf32>, i32 -> vector<8x128xf32>
    %c0_1 = arith.constant 0 : index
    %c0_2 = arith.constant 0 : index
    %2 = vector.load %arg1[%c0_1, %c0_2] : memref<8x128xf32, #tpu.memory_space<vmem>>, vector<8x128xf32>
    tpu.vector_store %arg1[%c0_1, %c0_2], %1 {strides = array<i32>} : memref<8x128xf32, #tpu.memory_space<vmem>>, vector<8x128xf32>,
    return
  }
}

</mosaic_0001>

<bundles_post_ra>
// kernel: tpu_custom_call.1
= control target key start
LH: loop header
LB: loop body
LE: loop exit
PB: predicated region body
PF: predicated region fallthrough
CT: control target
= control target key end

     0   :  { %6 = vsyncpa [#allocation3], 0  ;;  %s118_s0 = inlined_call_operand.hbm [shape: f32[8,128], index: 0, kind: input, shape index: {}]   ;;  %s119_s1 = inlined_call_operand.hbm [shape: f32[8,128], index: 1, kind: output, shape index: {}]  }
   0x1   :  { %7 = vsyncpa [#allocation4], 0  ;;  %s13_s8 = sshll.u32 %s118_s0, 4  ;;  %s99_s9 = smov [#allocation2]   ;;  %s14_s8 = int_to_ptr.hbm [resolvable:$true] %s13_s8 }
   0x2   :  { %s15_s10 = sshll.u32 %s99_s9, 4  ;;  %s16_s10 = int_to_ptr.vmem [resolvable:$true] %s15_s10 }
   0x3   :  { %18 = dma.hbm_to_vmem [thread:$0]  %s14_s8, 128, %s16_s10, [#allocation3]  }
   0x4   :  { %95 = dma.done.wait [#allocation3], 128  }
   0x5   :  { %96 = vsyncadd [#allocation3], 4294967168  ;;  %v23_v0 = vld [vmem:[#allocation2] sm:$0xff]  ;;  %s100_s11 = smov 1   ;;  %s101_s12 = smov [#allocation5]  }
   0x6   :  { %24 = vrot.lane.b32.xlu0 %v23_v0, %s100_s11  ;;  %s32_s13 = sshll.u32 %s101_s12, 4  ;;  %s34_s16 = sshll.u32 %s119_s1, 4  ;;  %s33_s13 = int_to_ptr.vmem [resolvable:$true] %s32_s13  ;;  %s35_s16 = int_to_ptr.hbm [resolvable:$true] %s34_s16 }
  0x78   :  { %v25_v1 = vpop.permute.xlu0 %24 }
  0x79   :  { %26 = vst [vmem:[#allocation5] sm:$0xff] %v25_v1 }
  0x7a   :  { %37 = dma.vmem_to_hbm [thread:$0]  %s33_s13, 128, %s35_s16, [#allocation4]  }
  0x7b   :  { %97 = dma.done.wait [#allocation4], 128  }
  0x7c   :  { %98 = vsyncadd [#allocation4], 4294967168 }
  0x7d   :  { %42 = vsyncpa [#allocation3], 1 }
  0x7e   :  { %43 = vsyncpa [#allocation4], 1 }

</bundles_post_ra>
